<compile_context>
chip_gen: v6e
topology: v6e:2x2x1
jax: 0.10.0
libtpu: 0.0.40
codegen_flags: <defaults>
</compile_context>

<pallas_src>
import functools

import jax
import jax.numpy as jnp
from jax.experimental import pallas as pl
from jax.experimental.pallas import tpu as pltpu


def _roll_batch_minus1(x, lane_is_last):
    """Given x of shape (S, 128) holding a flat batch row-major
    (flat = s*128 + l), return y with y[flat] = x[(flat + 1) % (S*128)],
    i.e. torch.roll(x_flat, shifts=-1).  Done entirely in registers:
    one lane roll, one sublane roll, one select on the lane-127 column."""
    S = x.shape[0]
    x_lane = pltpu.roll(x, shift=127, axis=1)          # [s,l] -> x[s, (l+1)%128]
    x_both = pltpu.roll(x_lane, shift=S - 1, axis=0)   # [s,l] -> x[(s+1)%S, (l+1)%128]
    return jnp.where(lane_is_last, x_both, x_lane)


def _loss_kernel(p_ref, tau_d_ref, tau_p_ref, u_ref, tau_cmd_ref, out_ref):
    """Single-invocation kernel.

    p_ref       : SMEM (20,) f32 = [F_max(5), dF_max(5), a_bot(2), a_top(2), w(6)]
    tau_d_ref   : VMEM (3, S, 128) f32    (batch = sublanes x lanes)
    tau_p_ref   : VMEM (3, S, 128) f32
    u_ref       : VMEM (5, S, 128) f32
    tau_cmd_ref : VMEM (3, S, 128) f32 output
    out_ref     : SMEM (8,) f32 output = [total, w0*L0 ... w5*L5, 0]
    """
    f32 = jnp.float32

    # ---- hoist all SMEM scalar reads off the vector critical path ----
    fmax0, fmax1, fmax2, fmax3, fmax4 = (p_ref[i] for i in range(5))
    dmax0, dmax1, dmax2, dmax3, dmax4 = (p_ref[5 + i] for i in range(5))
    bot0, bot1 = p_ref[10], p_ref[11]
    top0, top1 = p_ref[12], p_ref[13]
    w0, w1, w2, w3, w4, w5 = (p_ref[14 + i] for i in range(6))

    u = u_ref[...]                 # (5, S, 128)
    tau_d = tau_d_ref[...]         # (3, S, 128)
    tau_p = tau_p_ref[...]         # (3, S, 128)
    S = u.shape[1]
    n = f32(3 * S * 128)

    # feature slabs, each one dense (S, 128) vreg block
    F1, F2, a2, F3, a3 = u[0], u[1], u[2], u[3], u[4]

    c2 = jnp.cos(a2)
    s2 = jnp.sin(a2)
    c3 = jnp.cos(a3)
    s3 = jnp.sin(a3)

    # ----- compute_tau_command: per-sample 3x3 B-matrix @ [F1, F2, F3] -----
    l1, l2, l3, l4 = -14.0, 14.5, -2.7, 2.7
    tau1 = c2 * F2 + c3 * F3                                     # [0,   cos, cos]
    tau2 = F1 + s2 * F2 + s3 * F3                                # [1,   sin, sin]
    tau3 = l2 * F1 + (l1 * s2 - l3 * c2) * F2 + (l1 * s3 - l4 * c3) * F3

    # full-vreg, unmasked row stores
    tau_cmd_ref[0] = tau1
    tau_cmd_ref[1] = tau2
    tau_cmd_ref[2] = tau3

    # ----- L_ground / L_force : MSE over 3*B elements (1 reduce each) -----
    d1 = tau1 - tau_d[0]
    d2 = tau2 - tau_d[1]
    d3 = tau3 - tau_d[2]
    ground_part = d1 * d1 + d2 * d2 + d3 * d3                    # (S, 128)
    L_ground = jnp.sum(ground_part) / n

    dp = tau_p - tau_d
    dp2 = dp * dp
    force_part = dp2[0] + dp2[1] + dp2[2]                        # (S, 128)
    L_force = jnp.sum(force_part) / n

    # ----- L_magnitude : sum(relu(|u| - F_max)) (1 reduce) -----
    mag = jnp.maximum(jnp.abs(F1) - fmax0, 0.0)
    mag = mag + jnp.maximum(jnp.abs(F2) - fmax1, 0.0)
    mag = mag + jnp.maximum(jnp.abs(a2) - fmax2, 0.0)
    mag = mag + jnp.maximum(jnp.abs(F3) - fmax3, 0.0)
    mag = mag + jnp.maximum(jnp.abs(a3) - fmax4, 0.0)
    L_mag = jnp.sum(mag)

    # ----- L_rate : torch.roll(u_hat, -1, dims=batch) penalty (1 reduce) -----
    lane_is_last = jax.lax.broadcasted_iota(jnp.int32, (S, 128), 1) == 127
    dmaxs = (dmax0, dmax1, dmax2, dmax3, dmax4)
    rate = None
    for f in range(5):
        uf = u[f]
        du_f = jnp.abs(uf - _roll_batch_minus1(uf, lane_is_last))
        pen = jnp.maximum(du_f - dmaxs[f], 0.0)
        rate = pen if rate is None else rate + pen
    L_rate = jnp.sum(rate)

    # ----- L_power : sum |F|^(3/2) over the three force rows (1 reduce) -----
    aF1 = jnp.abs(F1)
    aF2 = jnp.abs(F2)
    aF3 = jnp.abs(F3)
    power_part = aF1 * jnp.sqrt(aF1) + aF2 * jnp.sqrt(aF2) + aF3 * jnp.sqrt(aF3)
    L_power = jnp.sum(power_part)

    # ----- L_azimuth : strict-inequality counts against scalar bounds (1 reduce) -----
    def _inside(a, lo, hi):
        return jnp.logical_and(a > lo, a < hi).astype(f32)

    az = (_inside(a2, bot0, bot1) + _inside(a3, bot0, bot1)
          + _inside(a2, top0, top1) + _inside(a3, top0, top1))
    L_az = jnp.sum(az)

    # ----- weighted terms + total, merged into a single SMEM output -----
    t0 = w0 * L_ground
    t1 = w1 * L_force
    t2 = w2 * L_mag
    t3 = w3 * L_rate
    t4 = w4 * L_power
    t5 = w5 * L_az

    out_ref[0] = t0 + t1 + t2 + t3 + t4 + t5
    out_ref[1] = t0
    out_ref[2] = t1
    out_ref[3] = t2
    out_ref[4] = t3
    out_ref[5] = t4
    out_ref[6] = t5
    out_ref[7] = f32(0.0)


@functools.partial(jax.jit, static_argnames=("alpha_weights",))
def constrained_control_loss(tau_desired, tau_pred, u_hat,
                             F_max, delta_F_max, alpha_bot, alpha_top,
                             alpha_weights=(10.0, 10.0, 1.0, 1e-06, 1e-06, 1.0)):
    """Pallas equivalent of ConstrainedControlLoss.forward.

    Returns (total_loss scalar, tau_command (B, 3), weighted individual losses (6,)).
    The whole wrapper is jit-fused with the pallas_call (one dispatch).
    """
    B = u_hat.shape[0]
    # The PyTorch module hard-codes B = 1024; the kernel only requires B % 128 == 0.
    assert B % 128 == 0, "batch must be a multiple of 128 (module uses 1024)"
    S = B // 128
    f32 = jnp.float32

    # Dense (feature, sublane, lane) layout for the kernel.
    u_t = jnp.transpose(u_hat.astype(f32)).reshape(5, S, 128)
    tau_d_t = jnp.transpose(tau_desired.astype(f32)).reshape(3, S, 128)
    tau_p_t = jnp.transpose(tau_pred.astype(f32)).reshape(3, S, 128)

    # All small constant vectors packed into one SMEM scalar array.
    params = jnp.concatenate([
        jnp.asarray(F_max, f32).reshape(-1),
        jnp.asarray(delta_F_max, f32).reshape(-1),
        jnp.asarray(alpha_bot, f32).reshape(-1),
        jnp.asarray(alpha_top, f32).reshape(-1),
        jnp.asarray(alpha_weights, f32).reshape(-1),
    ])                                                  # (20,)

    vmem = pl.BlockSpec(memory_space=pltpu.MemorySpace.VMEM)
    smem = pl.BlockSpec(memory_space=pltpu.MemorySpace.SMEM)

    out_shapes = (
        jax.ShapeDtypeStruct((3, S, 128), f32),   # tau_command, lane-dense
        jax.ShapeDtypeStruct((8,), f32),          # [total, 6 weighted losses, pad]
    )

    tau_cmd_t, scalars = pl.pallas_call(
        _loss_kernel,
        out_shape=out_shapes,
        in_specs=[smem, vmem, vmem, vmem],
        out_specs=(vmem, smem),
    )(params, tau_d_t, tau_p_t, u_t)

    tau_cmd = jnp.transpose(tau_cmd_t.reshape(3, B))    # back to PyTorch (B, 3)
    return scalars[0], tau_cmd, scalars[1:7]


def _reference(tau_desired, tau_pred, u_hat, F_max, delta_F_max,
               alpha_bot, alpha_top, alpha_weights):
    """Pure-JAX reference of the PyTorch forward (exact elementwise 3x3
    contraction so the check is not polluted by TPU reduced-precision matmul)."""
    l1, l2, l3, l4 = -14.0, 14.5, -2.7, 2.7
    a2, a3 = u_hat[:, 2], u_hat[:, 4]
    B11 = jnp.zeros_like(a2)
    B21 = jnp.ones_like(a2)
    B31 = l2 * jnp.ones_like(a2)
    Bm = jnp.stack([
        jnp.stack([B11, jnp.cos(a2), jnp.cos(a3)], axis=-1),
        jnp.stack([B21, jnp.sin(a2), jnp.sin(a3)], axis=-1),
        jnp.stack([B31, l1 * jnp.sin(a2) - l3 * jnp.cos(a2),
                   l1 * jnp.sin(a3) - l4 * jnp.cos(a3)], axis=-1)], axis=1)
    uf = u_hat[:, jnp.array([0, 1, 3])]                      # (B, 3)
    tau_cmd = jnp.sum(Bm * uf[:, None, :], axis=-1)          # (B, 3)

    L_ground = jnp.mean((tau_cmd - tau_desired) ** 2)
    L_force = jnp.mean((tau_pred - tau_desired) ** 2)
    L_magnitude = jnp.sum(jnp.maximum(jnp.abs(u_hat) - F_max, 0.0))
    u_shift = jnp.roll(u_hat, shift=-1, axis=0)
    L_rate = jnp.sum(jax.nn.relu(jnp.abs(u_hat - u_shift) - delta_F_max))
    L_power = jnp.sum(jnp.abs(uf) ** 1.5)
    al = u_hat[:, jnp.array([2, 4])]
    L_bot = jnp.sum((al < alpha_bot[1]) & (al > alpha_bot[0]))
    L_top = jnp.sum((al < alpha_top[1]) & (al > alpha_top[0]))
    L_azimuth = (L_bot + L_top).astype(jnp.float32)

    w = alpha_weights
    indiv = jnp.stack([w[0] * L_ground, w[1] * L_force, w[2] * L_magnitude,
                       w[3] * L_rate, w[4] * L_power, w[5] * L_azimuth])
    total = jnp.sum(indiv)
    return total, tau_cmd, indiv


if __name__ == "__main__":
    # The module hard-codes a batch of 1024 (torch.zeros(1024) inside
    # compute_tau_command), so the example uses B = 1024.
    B = 1024
    key = jax.random.PRNGKey(0)
    k1, k2, k3 = jax.random.split(key, 3)

    # u_hat columns: [F1, F2, alpha2, F3, alpha3] with spec-like ranges.
    scales = jnp.array([[10000.0, 5000.0, 3.14, 5000.0, 3.14]], jnp.float32)
    u_hat = jax.random.uniform(k1, (B, 5), jnp.float32, -1.0, 1.0) * scales
    tau_desired = jax.random.normal(k2, (B, 3), jnp.float32) * 1000.0
    tau_pred = tau_desired + jax.random.normal(k3, (B, 3), jnp.float32) * 10.0

    # Module "parameters" from the source script / constructor args.
    F_max = jnp.array([30000.0, 60000.0, 3.14, 60000.0, 3.14], jnp.float32)
    delta_F_max = jnp.array([1000.0, 1000.0, 0.17, 1000.0, 0.17], jnp.float32)
    alpha_bot = jnp.array([-1.745, -1.396], jnp.float32)
    alpha_top = jnp.array([1.396, 1.745], jnp.float32)
    alpha_weights = (10.0, 10.0, 1.0, 1e-06, 1e-06, 1.0)

    total, tau_cmd, indiv = constrained_control_loss(
        tau_desired, tau_pred, u_hat, F_max, delta_F_max,
        alpha_bot, alpha_top, alpha_weights=alpha_weights)
    jax.block_until_ready((total, tau_cmd, indiv))

    ref_total, ref_tau, ref_indiv = _reference(
        tau_desired, tau_pred, u_hat, F_max, delta_F_max,
        alpha_bot, alpha_top, jnp.asarray(alpha_weights, jnp.float32))

    assert tau_cmd.shape == (B, 3)
    # Tolerances scaled to the data: tau values reach ~2e5; f32 transcendental
    # differences between Mosaic and XLA give absolute deviations of O(1e-2).
    assert jnp.allclose(tau_cmd, ref_tau, rtol=1e-4, atol=1.0), "tau_command mismatch"
    assert jnp.allclose(indiv, ref_indiv, rtol=1e-3, atol=1e-3), "individual loss mismatch"
    assert jnp.allclose(total, ref_total, rtol=1e-3, atol=1e-3), "total loss mismatch"

    print("KERNEL_OK")
</pallas_src>

<mosaic_0001>
module attributes {stable_mosaic.version = 11 : i64} {
  func.func @_loss_kernel(%arg0: memref<20xf32, #tpu.memory_space<smem>>, %arg1: memref<3x8x128xf32, #tpu.memory_space<vmem>>, %arg2: memref<3x8x128xf32, #tpu.memory_space<vmem>>, %arg3: memref<5x8x128xf32, #tpu.memory_space<vmem>>, %arg4: memref<3x8x128xf32, #tpu.memory_space<vmem>>, %arg5: memref<8xf32, #tpu.memory_space<smem>>) attributes {dimension_semantics = [], scalar_prefetch = 0 : i64, scratch_operands = 0 : i64, tpu.core_type = #tpu.core_type<tc>} {
    %c0 = arith.constant 0 : index
    %0 = memref.load %arg0[%c0] : memref<20xf32, #tpu.memory_space<smem>>
    %c1 = arith.constant 1 : index
    %1 = memref.load %arg0[%c1] : memref<20xf32, #tpu.memory_space<smem>>
    %c2 = arith.constant 2 : index
    %2 = memref.load %arg0[%c2] : memref<20xf32, #tpu.memory_space<smem>>
    %c3 = arith.constant 3 : index
    %3 = memref.load %arg0[%c3] : memref<20xf32, #tpu.memory_space<smem>>
    %c4 = arith.constant 4 : index
    %4 = memref.load %arg0[%c4] : memref<20xf32, #tpu.memory_space<smem>>
    %c5 = arith.constant 5 : index
    %5 = memref.load %arg0[%c5] : memref<20xf32, #tpu.memory_space<smem>>
    %c6 = arith.constant 6 : index
    %6 = memref.load %arg0[%c6] : memref<20xf32, #tpu.memory_space<smem>>
    %c7 = arith.constant 7 : index
    %7 = memref.load %arg0[%c7] : memref<20xf32, #tpu.memory_space<smem>>
    %c8 = arith.constant 8 : index
    %8 = memref.load %arg0[%c8] : memref<20xf32, #tpu.memory_space<smem>>
    %c9 = arith.constant 9 : index
    %9 = memref.load %arg0[%c9] : memref<20xf32, #tpu.memory_space<smem>>
    %c10 = arith.constant 10 : index
    %10 = memref.load %arg0[%c10] : memref<20xf32, #tpu.memory_space<smem>>
    %c11 = arith.constant 11 : index
    %11 = memref.load %arg0[%c11] : memref<20xf32, #tpu.memory_space<smem>>
    %c12 = arith.constant 12 : index
    %12 = memref.load %arg0[%c12] : memref<20xf32, #tpu.memory_space<smem>>
    %c13 = arith.constant 13 : index
    %13 = memref.load %arg0[%c13] : memref<20xf32, #tpu.memory_space<smem>>
    %c14 = arith.constant 14 : index
    %14 = memref.load %arg0[%c14] : memref<20xf32, #tpu.memory_space<smem>>
    %c15 = arith.constant 15 : index
    %15 = memref.load %arg0[%c15] : memref<20xf32, #tpu.memory_space<smem>>
    %c16 = arith.constant 16 : index
    %16 = memref.load %arg0[%c16] : memref<20xf32, #tpu.memory_space<smem>>
    %c17 = arith.constant 17 : index
    %17 = memref.load %arg0[%c17] : memref<20xf32, #tpu.memory_space<smem>>
    %c18 = arith.constant 18 : index
    %18 = memref.load %arg0[%c18] : memref<20xf32, #tpu.memory_space<smem>>
    %c19 = arith.constant 19 : index
    %19 = memref.load %arg0[%c19] : memref<20xf32, #tpu.memory_space<smem>>
    %c0_0 = arith.constant 0 : index
    %c0_1 = arith.constant 0 : index
    %c0_2 = arith.constant 0 : index
    %20 = vector.load %arg3[%c0_0, %c0_1, %c0_2] : memref<5x8x128xf32, #tpu.memory_space<vmem>>, vector<5x8x128xf32>
    %c0_3 = arith.constant 0 : index
    %c0_4 = arith.constant 0 : index
    %c0_5 = arith.constant 0 : index
    %21 = vector.load %arg1[%c0_3, %c0_4, %c0_5] : memref<3x8x128xf32, #tpu.memory_space<vmem>>, vector<3x8x128xf32>
    %c0_6 = arith.constant 0 : index
    %c0_7 = arith.constant 0 : index
    %c0_8 = arith.constant 0 : index
    %22 = vector.load %arg2[%c0_6, %c0_7, %c0_8] : memref<3x8x128xf32, #tpu.memory_space<vmem>>, vector<3x8x128xf32>
    %23 = vector.extract_strided_slice %20 {offsets = [0, 0, 0], sizes = [1, 8, 128], strides = [1, 1, 1]} : vector<5x8x128xf32> to vector<1x8x128xf32>
    %24 = vector.shape_cast %23 : vector<1x8x128xf32> to vector<8x128xf32>
    %25 = vector.extract_strided_slice %20 {offsets = [1, 0, 0], sizes = [1, 8, 128], strides = [1, 1, 1]} : vector<5x8x128xf32> to vector<1x8x128xf32>
    %26 = vector.shape_cast %25 : vector<1x8x128xf32> to vector<8x128xf32>
    %27 = vector.extract_strided_slice %20 {offsets = [2, 0, 0], sizes = [1, 8, 128], strides = [1, 1, 1]} : vector<5x8x128xf32> to vector<1x8x128xf32>
    %28 = vector.shape_cast %27 : vector<1x8x128xf32> to vector<8x128xf32>
    %29 = vector.extract_strided_slice %20 {offsets = [3, 0, 0], sizes = [1, 8, 128], strides = [1, 1, 1]} : vector<5x8x128xf32> to vector<1x8x128xf32>
    %30 = vector.shape_cast %29 : vector<1x8x128xf32> to vector<8x128xf32>
    %31 = vector.extract_strided_slice %20 {offsets = [4, 0, 0], sizes = [1, 8, 128], strides = [1, 1, 1]} : vector<5x8x128xf32> to vector<1x8x128xf32>
    %32 = vector.shape_cast %31 : vector<1x8x128xf32> to vector<8x128xf32>
    %33 = math.cos %28 : vector<8x128xf32>
    %34 = math.sin %28 : vector<8x128xf32>
    %35 = math.cos %32 : vector<8x128xf32>
    %36 = math.sin %32 : vector<8x128xf32>
    %37 = arith.mulf %33, %26 : vector<8x128xf32>
    %38 = arith.mulf %35, %30 : vector<8x128xf32>
    %39 = arith.addf %37, %38 : vector<8x128xf32>
    %40 = arith.mulf %34, %26 : vector<8x128xf32>
    %41 = arith.addf %24, %40 : vector<8x128xf32>
    %42 = arith.mulf %36, %30 : vector<8x128xf32>
    %43 = arith.addf %41, %42 : vector<8x128xf32>
    %cst = arith.constant 1.450000e+01 : f32
    %44 = vector.broadcast %cst : f32 to vector<8x128xf32>
    %45 = arith.mulf %44, %24 : vector<8x128xf32>
    %cst_9 = arith.constant -1.400000e+01 : f32
    %46 = vector.broadcast %cst_9 : f32 to vector<8x128xf32>
    %47 = arith.mulf %46, %34 : vector<8x128xf32>
    %cst_10 = arith.constant -2.700000e+00 : f32
    %48 = vector.broadcast %cst_10 : f32 to vector<8x128xf32>
    %49 = arith.mulf %48, %33 : vector<8x128xf32>
    %50 = arith.subf %47, %49 : vector<8x128xf32>
    %51 = arith.mulf %50, %26 : vector<8x128xf32>
    %52 = arith.addf %45, %51 : vector<8x128xf32>
    %cst_11 = arith.constant -1.400000e+01 : f32
    %53 = vector.broadcast %cst_11 : f32 to vector<8x128xf32>
    %54 = arith.mulf %53, %36 : vector<8x128xf32>
    %cst_12 = arith.constant 2.700000e+00 : f32
    %55 = vector.broadcast %cst_12 : f32 to vector<8x128xf32>
    %56 = arith.mulf %55, %35 : vector<8x128xf32>
    %57 = arith.subf %54, %56 : vector<8x128xf32>
    %58 = arith.mulf %57, %30 : vector<8x128xf32>
    %59 = arith.addf %52, %58 : vector<8x128xf32>
    %c0_13 = arith.constant 0 : index
    %c0_14 = arith.constant 0 : index
    %c0_15 = arith.constant 0 : index
    %60 = vector.load %arg4[%c0_13, %c0_14, %c0_15] : memref<3x8x128xf32, #tpu.memory_space<vmem>>, vector<1x8x128xf32>
    %61 = vector.shape_cast %60 : vector<1x8x128xf32> to vector<8x128xf32>
    %62 = vector.shape_cast %39 : vector<8x128xf32> to vector<1x8x128xf32>
    tpu.vector_store %arg4[%c0_13, %c0_14, %c0_15], %62 {strides = array<i32>} : memref<3x8x128xf32, #tpu.memory_space<vmem>>, vector<1x8x128xf32>,
    %c1_16 = arith.constant 1 : index
    %c0_17 = arith.constant 0 : index
    %c0_18 = arith.constant 0 : index
    %63 = vector.load %arg4[%c1_16, %c0_17, %c0_18] : memref<3x8x128xf32, #tpu.memory_space<vmem>>, vector<1x8x128xf32>
    %64 = vector.shape_cast %63 : vector<1x8x128xf32> to vector<8x128xf32>
    %65 = vector.shape_cast %43 : vector<8x128xf32> to vector<1x8x128xf32>
    tpu.vector_store %arg4[%c1_16, %c0_17, %c0_18], %65 {strides = array<i32>} : memref<3x8x128xf32, #tpu.memory_space<vmem>>, vector<1x8x128xf32>,
    %c2_19 = arith.constant 2 : index
    %c0_20 = arith.constant 0 : index
    %c0_21 = arith.constant 0 : index
    %66 = vector.load %arg4[%c2_19, %c0_20, %c0_21] : memref<3x8x128xf32, #tpu.memory_space<vmem>>, vector<1x8x128xf32>
    %67 = vector.shape_cast %66 : vector<1x8x128xf32> to vector<8x128xf32>
    %68 = vector.shape_cast %59 : vector<8x128xf32> to vector<1x8x128xf32>
    tpu.vector_store %arg4[%c2_19, %c0_20, %c0_21], %68 {strides = array<i32>} : memref<3x8x128xf32, #tpu.memory_space<vmem>>, vector<1x8x128xf32>,
    %69 = vector.extract_strided_slice %21 {offsets = [0, 0, 0], sizes = [1, 8, 128], strides = [1, 1, 1]} : vector<3x8x128xf32> to vector<1x8x128xf32>
    %70 = vector.shape_cast %69 : vector<1x8x128xf32> to vector<8x128xf32>
    %71 = arith.subf %39, %70 : vector<8x128xf32>
    %72 = vector.extract_strided_slice %21 {offsets = [1, 0, 0], sizes = [1, 8, 128], strides = [1, 1, 1]} : vector<3x8x128xf32> to vector<1x8x128xf32>
    %73 = vector.shape_cast %72 : vector<1x8x128xf32> to vector<8x128xf32>
    %74 = arith.subf %43, %73 : vector<8x128xf32>
    %75 = vector.extract_strided_slice %21 {offsets = [2, 0, 0], sizes = [1, 8, 128], strides = [1, 1, 1]} : vector<3x8x128xf32> to vector<1x8x128xf32>
    %76 = vector.shape_cast %75 : vector<1x8x128xf32> to vector<8x128xf32>
    %77 = arith.subf %59, %76 : vector<8x128xf32>
    %78 = arith.mulf %71, %71 : vector<8x128xf32>
    %79 = arith.mulf %74, %74 : vector<8x128xf32>
    %80 = arith.addf %78, %79 : vector<8x128xf32>
    %81 = arith.mulf %77, %77 : vector<8x128xf32>
    %82 = arith.addf %80, %81 : vector<8x128xf32>
    %83 = vector.shape_cast %82 : vector<8x128xf32> to vector<1x8x128xf32>
    %cst_22 = arith.constant dense<0.000000e+00> : vector<1xf32>
    %84 = vector.multi_reduction <add>, %83, %cst_22 [1, 2] : vector<1x8x128xf32> to vector<1xf32>
    %85 = vector.shape_cast %84 : vector<1xf32> to vector<1x1x1xf32>
    %86 = vector.extract %85[0, 0, 0] : f32 from vector<1x1x1xf32>
    %cst_23 = arith.constant 3.072000e+03 : f32
    %87 = arith.divf %86, %cst_23 : f32
    %88 = arith.subf %22, %21 : vector<3x8x128xf32>
    %89 = arith.mulf %88, %88 : vector<3x8x128xf32>
    %90 = vector.extract_strided_slice %89 {offsets = [0, 0, 0], sizes = [1, 8, 128], strides = [1, 1, 1]} : vector<3x8x128xf32> to vector<1x8x128xf32>
    %91 = vector.shape_cast %90 : vector<1x8x128xf32> to vector<8x128xf32>
    %92 = vector.extract_strided_slice %89 {offsets = [1, 0, 0], sizes = [1, 8, 128], strides = [1, 1, 1]} : vector<3x8x128xf32> to vector<1x8x128xf32>
    %93 = vector.shape_cast %92 : vector<1x8x128xf32> to vector<8x128xf32>
    %94 = arith.addf %91, %93 : vector<8x128xf32>
    %95 = vector.extract_strided_slice %89 {offsets = [2, 0, 0], sizes = [1, 8, 128], strides = [1, 1, 1]} : vector<3x8x128xf32> to vector<1x8x128xf32>
    %96 = vector.shape_cast %95 : vector<1x8x128xf32> to vector<8x128xf32>
    %97 = arith.addf %94, %96 : vector<8x128xf32>
    %98 = vector.shape_cast %97 : vector<8x128xf32> to vector<1x8x128xf32>
    %cst_24 = arith.constant dense<0.000000e+00> : vector<1xf32>
    %99 = vector.multi_reduction <add>, %98, %cst_24 [1, 2] : vector<1x8x128xf32> to vector<1xf32>
    %100 = vector.shape_cast %99 : vector<1xf32> to vector<1x1x1xf32>
    %101 = vector.extract %100[0, 0, 0] : f32 from vector<1x1x1xf32>
    %cst_25 = arith.constant 3.072000e+03 : f32
    %102 = arith.divf %101, %cst_25 : f32
    %103 = math.absf %24 : vector<8x128xf32>
    %104 = vector.broadcast %0 : f32 to vector<8x128xf32>
    %105 = arith.subf %103, %104 : vector<8x128xf32>
    %cst_26 = arith.constant 0.000000e+00 : f32
    %106 = vector.broadcast %cst_26 : f32 to vector<8x128xf32>
    %107 = arith.maximumf %105, %106 : vector<8x128xf32>
    %108 = math.absf %26 : vector<8x128xf32>
    %109 = vector.broadcast %1 : f32 to vector<8x128xf32>
    %110 = arith.subf %108, %109 : vector<8x128xf32>
    %cst_27 = arith.constant 0.000000e+00 : f32
    %111 = vector.broadcast %cst_27 : f32 to vector<8x128xf32>
    %112 = arith.maximumf %110, %111 : vector<8x128xf32>
    %113 = arith.addf %107, %112 : vector<8x128xf32>
    %114 = math.absf %28 : vector<8x128xf32>
    %115 = vector.broadcast %2 : f32 to vector<8x128xf32>
    %116 = arith.subf %114, %115 : vector<8x128xf32>
    %cst_28 = arith.constant 0.000000e+00 : f32
    %117 = vector.broadcast %cst_28 : f32 to vector<8x128xf32>
    %118 = arith.maximumf %116, %117 : vector<8x128xf32>
    %119 = arith.addf %113, %118 : vector<8x128xf32>
    %120 = math.absf %30 : vector<8x128xf32>
    %121 = vector.broadcast %3 : f32 to vector<8x128xf32>
    %122 = arith.subf %120, %121 : vector<8x128xf32>
    %cst_29 = arith.constant 0.000000e+00 : f32
    %123 = vector.broadcast %cst_29 : f32 to vector<8x128xf32>
    %124 = arith.maximumf %122, %123 : vector<8x128xf32>
    %125 = arith.addf %119, %124 : vector<8x128xf32>
    %126 = math.absf %32 : vector<8x128xf32>
    %127 = vector.broadcast %4 : f32 to vector<8x128xf32>
    %128 = arith.subf %126, %127 : vector<8x128xf32>
    %cst_30 = arith.constant 0.000000e+00 : f32
    %129 = vector.broadcast %cst_30 : f32 to vector<8x128xf32>
    %130 = arith.maximumf %128, %129 : vector<8x128xf32>
    %131 = arith.addf %125, %130 : vector<8x128xf32>
    %132 = vector.shape_cast %131 : vector<8x128xf32> to vector<1x8x128xf32>
    %cst_31 = arith.constant dense<0.000000e+00> : vector<1xf32>
    %133 = vector.multi_reduction <add>, %132, %cst_31 [1, 2] : vector<1x8x128xf32> to vector<1xf32>
    %134 = vector.shape_cast %133 : vector<1xf32> to vector<1x1x1xf32>
    %135 = vector.extract %134[0, 0, 0] : f32 from vector<1x1x1xf32>
    %136 = tpu.iota {dimensions = array<i32: 1>} : vector<8x128xi32>
    %c127_i32 = arith.constant 127 : i32
    %137 = vector.broadcast %c127_i32 : i32 to vector<8x128xi32>
    %138 = arith.cmpi eq, %136, %137 : vector<8x128xi32>
    %139 = vector.extract_strided_slice %20 {offsets = [0, 0, 0], sizes = [1, 8, 128], strides = [1, 1, 1]} : vector<5x8x128xf32> to vector<1x8x128xf32>
    %140 = vector.shape_cast %139 : vector<1x8x128xf32> to vector<8x128xf32>
    %c127_i32_32 = arith.constant 127 : i32
    %141 = tpu.dynamic_rotate %140 by %c127_i32_32 dim 1 : vector<8x128xf32>, i32 -> vector<8x128xf32>
    %c7_i32 = arith.constant 7 : i32
    %142 = tpu.dynamic_rotate %141 by %c7_i32 dim 0 : vector<8x128xf32>, i32 -> vector<8x128xf32>
    %143 = arith.select %138, %142, %141 : vector<8x128xi1>, vector<8x128xf32>
    %144 = arith.subf %140, %143 : vector<8x128xf32>
    %145 = math.absf %144 : vector<8x128xf32>
    %146 = vector.broadcast %5 : f32 to vector<8x128xf32>
    %147 = arith.subf %145, %146 : vector<8x128xf32>
    %cst_33 = arith.constant 0.000000e+00 : f32
    %148 = vector.broadcast %cst_33 : f32 to vector<8x128xf32>
    %149 = arith.maximumf %147, %148 : vector<8x128xf32>
    %150 = vector.extract_strided_slice %20 {offsets = [1, 0, 0], sizes = [1, 8, 128], strides = [1, 1, 1]} : vector<5x8x128xf32> to vector<1x8x128xf32>
    %151 = vector.shape_cast %150 : vector<1x8x128xf32> to vector<8x128xf32>
    %c127_i32_34 = arith.constant 127 : i32
    %152 = tpu.dynamic_rotate %151 by %c127_i32_34 dim 1 : vector<8x128xf32>, i32 -> vector<8x128xf32>
    %c7_i32_35 = arith.constant 7 : i32
    %153 = tpu.dynamic_rotate %152 by %c7_i32_35 dim 0 : vector<8x128xf32>, i32 -> vector<8x128xf32>
    %154 = arith.select %138, %153, %152 : vector<8x128xi1>, vector<8x128xf32>
    %155 = arith.subf %151, %154 : vector<8x128xf32>
    %156 = math.absf %155 : vector<8x128xf32>
    %157 = vector.broadcast %6 : f32 to vector<8x128xf32>
    %158 = arith.subf %156, %157 : vector<8x128xf32>
    %cst_36 = arith.constant 0.000000e+00 : f32
    %159 = vector.broadcast %cst_36 : f32 to vector<8x128xf32>
    %160 = arith.maximumf %158, %159 : vector<8x128xf32>
    %161 = arith.addf %149, %160 : vector<8x128xf32>
    %162 = vector.extract_strided_slice %20 {offsets = [2, 0, 0], sizes = [1, 8, 128], strides = [1, 1, 1]} : vector<5x8x128xf32> to vector<1x8x128xf32>
    %163 = vector.shape_cast %162 : vector<1x8x128xf32> to vector<8x128xf32>
    %c127_i32_37 = arith.constant 127 : i32
    %164 = tpu.dynamic_rotate %163 by %c127_i32_37 dim 1 : vector<8x128xf32>, i32 -> vector<8x128xf32>
    %c7_i32_38 = arith.constant 7 : i32
    %165 = tpu.dynamic_rotate %164 by %c7_i32_38 dim 0 : vector<8x128xf32>, i32 -> vector<8x128xf32>
    %166 = arith.select %138, %165, %164 : vector<8x128xi1>, vector<8x128xf32>
    %167 = arith.subf %163, %166 : vector<8x128xf32>
    %168 = math.absf %167 : vector<8x128xf32>
    %169 = vector.broadcast %7 : f32 to vector<8x128xf32>
    %170 = arith.subf %168, %169 : vector<8x128xf32>
    %cst_39 = arith.constant 0.000000e+00 : f32
    %171 = vector.broadcast %cst_39 : f32 to vector<8x128xf32>
    %172 = arith.maximumf %170, %171 : vector<8x128xf32>
    %173 = arith.addf %161, %172 : vector<8x128xf32>
    %174 = vector.extract_strided_slice %20 {offsets = [3, 0, 0], sizes = [1, 8, 128], strides = [1, 1, 1]} : vector<5x8x128xf32> to vector<1x8x128xf32>
    %175 = vector.shape_cast %174 : vector<1x8x128xf32> to vector<8x128xf32>
    %c127_i32_40 = arith.constant 127 : i32
    %176 = tpu.dynamic_rotate %175 by %c127_i32_40 dim 1 : vector<8x128xf32>, i32 -> vector<8x128xf32>
    %c7_i32_41 = arith.constant 7 : i32
    %177 = tpu.dynamic_rotate %176 by %c7_i32_41 dim 0 : vector<8x128xf32>, i32 -> vector<8x128xf32>
    %178 = arith.select %138, %177, %176 : vector<8x128xi1>, vector<8x128xf32>
    %179 = arith.subf %175, %178 : vector<8x128xf32>
    %180 = math.absf %179 : vector<8x128xf32>
    %181 = vector.broadcast %8 : f32 to vector<8x128xf32>
    %182 = arith.subf %180, %181 : vector<8x128xf32>
    %cst_42 = arith.constant 0.000000e+00 : f32
    %183 = vector.broadcast %cst_42 : f32 to vector<8x128xf32>
    %184 = arith.maximumf %182, %183 : vector<8x128xf32>
    %185 = arith.addf %173, %184 : vector<8x128xf32>
    %186 = vector.extract_strided_slice %20 {offsets = [4, 0, 0], sizes = [1, 8, 128], strides = [1, 1, 1]} : vector<5x8x128xf32> to vector<1x8x128xf32>
    %187 = vector.shape_cast %186 : vector<1x8x128xf32> to vector<8x128xf32>
    %c127_i32_43 = arith.constant 127 : i32
    %188 = tpu.dynamic_rotate %187 by %c127_i32_43 dim 1 : vector<8x128xf32>, i32 -> vector<8x128xf32>
    %c7_i32_44 = arith.constant 7 : i32
    %189 = tpu.dynamic_rotate %188 by %c7_i32_44 dim 0 : vector<8x128xf32>, i32 -> vector<8x128xf32>
    %190 = arith.select %138, %189, %188 : vector<8x128xi1>, vector<8x128xf32>
    %191 = arith.subf %187, %190 : vector<8x128xf32>
    %192 = math.absf %191 : vector<8x128xf32>
    %193 = vector.broadcast %9 : f32 to vector<8x128xf32>
    %194 = arith.subf %192, %193 : vector<8x128xf32>
    %cst_45 = arith.constant 0.000000e+00 : f32
    %195 = vector.broadcast %cst_45 : f32 to vector<8x128xf32>
    %196 = arith.maximumf %194, %195 : vector<8x128xf32>
    %197 = arith.addf %185, %196 : vector<8x128xf32>
    %198 = vector.shape_cast %197 : vector<8x128xf32> to vector<1x8x128xf32>
    %cst_46 = arith.constant dense<0.000000e+00> : vector<1xf32>
    %199 = vector.multi_reduction <add>, %198, %cst_46 [1, 2] : vector<1x8x128xf32> to vector<1xf32>
    %200 = vector.shape_cast %199 : vector<1xf32> to vector<1x1x1xf32>
    %201 = vector.extract %200[0, 0, 0] : f32 from vector<1x1x1xf32>
    %202 = math.absf %24 : vector<8x128xf32>
    %203 = math.absf %26 : vector<8x128xf32>
    %204 = math.absf %30 : vector<8x128xf32>
    %205 = math.sqrt %202 : vector<8x128xf32>
    %206 = arith.mulf %202, %205 : vector<8x128xf32>
    %207 = math.sqrt %203 : vector<8x128xf32>
    %208 = arith.mulf %203, %207 : vector<8x128xf32>
    %209 = arith.addf %206, %208 : vector<8x128xf32>
    %210 = math.sqrt %204 : vector<8x128xf32>
    %211 = arith.mulf %204, %210 : vector<8x128xf32>
    %212 = arith.addf %209, %211 : vector<8x128xf32>
    %213 = vector.shape_cast %212 : vector<8x128xf32> to vector<1x8x128xf32>
    %cst_47 = arith.constant dense<0.000000e+00> : vector<1xf32>
    %214 = vector.multi_reduction <add>, %213, %cst_47 [1, 2] : vector<1x8x128xf32> to vector<1xf32>
    %215 = vector.shape_cast %214 : vector<1xf32> to vector<1x1x1xf32>
    %216 = vector.extract %215[0, 0, 0] : f32 from vector<1x1x1xf32>
    %217 = vector.broadcast %10 : f32 to vector<8x128xf32>
    %218 = arith.cmpf ogt, %28, %217 : vector<8x128xf32>
    %219 = vector.broadcast %11 : f32 to vector<8x128xf32>
    %220 = arith.cmpf olt, %28, %219 : vector<8x128xf32>
    %221 = arith.andi %218, %220 : vector<8x128xi1>
    %222 = arith.extui %221 : vector<8x128xi1> to vector<8x128xi32>
    %223 = arith.sitofp %222 : vector<8x128xi32> to vector<8x128xf32>
    %224 = vector.broadcast %10 : f32 to vector<8x128xf32>
    %225 = arith.cmpf ogt, %32, %224 : vector<8x128xf32>
    %226 = vector.broadcast %11 : f32 to vector<8x128xf32>
    %227 = arith.cmpf olt, %32, %226 : vector<8x128xf32>
    %228 = arith.andi %225, %227 : vector<8x128xi1>
    %229 = arith.extui %228 : vector<8x128xi1> to vector<8x128xi32>
    %230 = arith.sitofp %229 : vector<8x128xi32> to vector<8x128xf32>
    %231 = arith.addf %223, %230 : vector<8x128xf32>
    %232 = vector.broadcast %12 : f32 to vector<8x128xf32>
    %233 = arith.cmpf ogt, %28, %232 : vector<8x128xf32>
    %234 = vector.broadcast %13 : f32 to vector<8x128xf32>
    %235 = arith.cmpf olt, %28, %234 : vector<8x128xf32>
    %236 = arith.andi %233, %235 : vector<8x128xi1>
    %237 = arith.extui %236 : vector<8x128xi1> to vector<8x128xi32>
    %238 = arith.sitofp %237 : vector<8x128xi32> to vector<8x128xf32>
    %239 = arith.addf %231, %238 : vector<8x128xf32>
    %240 = vector.broadcast %12 : f32 to vector<8x128xf32>
    %241 = arith.cmpf ogt, %32, %240 : vector<8x128xf32>
    %242 = vector.broadcast %13 : f32 to vector<8x128xf32>
    %243 = arith.cmpf olt, %32, %242 : vector<8x128xf32>
    %244 = arith.andi %241, %243 : vector<8x128xi1>
    %245 = arith.extui %244 : vector<8x128xi1> to vector<8x128xi32>
    %246 = arith.sitofp %245 : vector<8x128xi32> to vector<8x128xf32>
    %247 = arith.addf %239, %246 : vector<8x128xf32>
    %248 = vector.shape_cast %247 : vector<8x128xf32> to vector<1x8x128xf32>
    %cst_48 = arith.constant dense<0.000000e+00> : vector<1xf32>
    %249 = vector.multi_reduction <add>, %248, %cst_48 [1, 2] : vector<1x8x128xf32> to vector<1xf32>
    %250 = vector.shape_cast %249 : vector<1xf32> to vector<1x1x1xf32>
    %251 = vector.extract %250[0, 0, 0] : f32 from vector<1x1x1xf32>
    %252 = arith.mulf %14, %87 : f32
    %253 = arith.mulf %15, %102 : f32
    %254 = arith.mulf %16, %135 : f32
    %255 = arith.mulf %17, %201 : f32
    %256 = arith.mulf %18, %216 : f32
    %257 = arith.mulf %19, %251 : f32
    %258 = arith.addf %252, %253 : f32
    %259 = arith.addf %258, %254 : f32
    %260 = arith.addf %259, %255 : f32
    %261 = arith.addf %260, %256 : f32
    %262 = arith.addf %261, %257 : f32
    %c0_49 = arith.constant 0 : index
    %263 = memref.load %arg5[%c0_49] : memref<8xf32, #tpu.memory_space<smem>>
    memref.store %262, %arg5[%c0_49] : memref<8xf32, #tpu.memory_space<smem>>
    %c1_50 = arith.constant 1 : index
    %264 = memref.load %arg5[%c1_50] : memref<8xf32, #tpu.memory_space<smem>>
    memref.store %252, %arg5[%c1_50] : memref<8xf32, #tpu.memory_space<smem>>
    %c2_51 = arith.constant 2 : index
    %265 = memref.load %arg5[%c2_51] : memref<8xf32, #tpu.memory_space<smem>>
    memref.store %253, %arg5[%c2_51] : memref<8xf32, #tpu.memory_space<smem>>
    %c3_52 = arith.constant 3 : index
    %266 = memref.load %arg5[%c3_52] : memref<8xf32, #tpu.memory_space<smem>>
    memref.store %254, %arg5[%c3_52] : memref<8xf32, #tpu.memory_space<smem>>
    %c4_53 = arith.constant 4 : index
    %267 = memref.load %arg5[%c4_53] : memref<8xf32, #tpu.memory_space<smem>>
    memref.store %255, %arg5[%c4_53] : memref<8xf32, #tpu.memory_space<smem>>
    %c5_54 = arith.constant 5 : index
    %268 = memref.load %arg5[%c5_54] : memref<8xf32, #tpu.memory_space<smem>>
    memref.store %256, %arg5[%c5_54] : memref<8xf32, #tpu.memory_space<smem>>
    %c6_55 = arith.constant 6 : index
    %269 = memref.load %arg5[%c6_55] : memref<8xf32, #tpu.memory_space<smem>>
    memref.store %257, %arg5[%c6_55] : memref<8xf32, #tpu.memory_space<smem>>
    %cst_56 = arith.constant 0.000000e+00 : f32
    %c7_57 = arith.constant 7 : index
    %270 = memref.load %arg5[%c7_57] : memref<8xf32, #tpu.memory_space<smem>>
    memref.store %cst_56, %arg5[%c7_57] : memref<8xf32, #tpu.memory_space<smem>>
    return
  }
}

</mosaic_0001>

<bundles_post_ra>
// kernel: constrained_control_loss.1
= control target key start
LH: loop header
LB: loop body
LE: loop exit
PB: predicated region body
PF: predicated region fallthrough
CT: control target
= control target key end

     0   :  { %11 = vsyncpa [#allocation3], 0  ;;  %s1256_s0 = inlined_call_operand.vmem [shape: f32[20], index: 0, kind: input, shape index: {}]   ;;  %s1257_s1 = inlined_call_operand.vmem [shape: f32[3,8,128], index: 1, kind: input, shape index: {}]   ;;  %s1258_s2 = inlined_call_operand.vmem [shape: f32[3,8,128], index: 2, kind: input, shape index: {}]   ;;  %s1259_s3 = inlined_call_operand.vmem [shape: f32[5,8,128], index: 3, kind: input, shape index: {}]   ;;  %s1260_s4 = inlined_call_operand.vmem [shape: f32[3,8,128], index: 4, kind: output, shape index: {0}]   ;;  %s1261_s5 = inlined_call_operand.vmem [shape: f32[8], index: 5, kind: output, shape index: {1}]  }
   0x1   :  { %12 = vsyncpa [#allocation4], 0  ;;  %s19_s20 = sshll.u32 %s1256_s0, 4  ;;  %s20_s20 = int_to_ptr.vmem [resolvable:$true] %s19_s20 }
   0x2   :  { %s839_s21 = scalar_lea.vmem %s20_s20, 16  ;;  %p844_p1 = scmp.lt.s32.totalorder %s20_s20, %s20_s20 }
   0x3   :  { %p840_p0 = scmp.ne.s32.totalorder %s20_s20, %s839_s21  ;;  %p845_p2 = scmp.lt.s32.totalorder %s839_s21, %s839_s21 }
   0x5   :  { %p846_p3 = por %p845_p2, %p844_p1 }
   0x7   :  { %p847_p4 = pnand %p846_p3, %p840_p0 }
   0x9   :  { %850 = shalt.err (!%p847_p4)
}
   0xa   :  { %s867_s22 = smov [#allocation2]  }
   0xb   :  { %22 = dma.vmem_to_smem %s20_s20, 16, %s867_s22, [#allocation3]  }
   0xc   :  { %863 = dma.done.wait [#allocation3], 16  }
   0xd   :  { %864 = vsyncadd [#allocation3], 4294967280 }
   0xe   :  { %32 = sfence }
   0xf   :  { %v914_v0 = vld [vmem:[%s1259_s3] sm:$0xff]  ;;  %v919_v1 = vld [vmem:[%s1259_s3 + $0x10] sm:$0xff]  ;;  %s868_s26 = smov 127   ;;  %v928_v2 = vld [vmem:[%s1259_s3 + $0x8] sm:$0xff]  ;;  %s753_s19 = sld [smem:[#allocation2 + $0x1]] }
  0x10   :  { %577 = vrot.lane.b32.xlu0 %v914_v0, %s868_s26  ;;  %596 = vrot.lane.b32.xlu1 %v919_v1, %s868_s26  ;;  %v933_v3 = vld [vmem:[%s1259_s3 + $0x18] sm:$0xff]  ;;  %v938_v4 = vld [vmem:[%s1257_s1] sm:$0xff]  ;;  %v67_v11 = vand.u32 2139095040, %v919_v1  ;;  %v962_v12 = vand.u32 2147483647, %v914_v0  ;;  %s984_s20 = sld [smem:[#allocation2 + $0x2]] }
  0x11   :  { %v943_v5 = vld [vmem:[%s1257_s1 + $0x8] sm:$0xff]  ;;  %v948_v6 = vld [vmem:[%s1257_s1 + $0x10] sm:$0xff]  ;;  %v61_v7 = vld [vmem:[%s1258_s2] sm:$0xff]  ;;  %v971_v15 = vand.u32 2147483647, %v919_v1  ;;  %s973_s1 = sld [smem:[#allocation2]] }
  0x12   :  { %v62_v8 = vld [vmem:[%s1258_s2 + $0x8] sm:$0xff]  ;;  %v63_v9 = vld [vmem:[%s1258_s2 + $0x10] sm:$0xff]  ;;  %v521_v10 = vsub.f32 %v61_v7, %v938_v4  ;;  %v978_v16 = vld [vmem:[%s1259_s3 + $0x20] sm:$0xff]  ;;  %v68_v18 = vshrl.u32 %v67_v11, 23  ;;  %v981_v19 = vand.u32 2147483647, %v928_v2  ;;  %825 = vrsqrt.f32 %v962_v12 }
  0x13   :  { %v522_v13 = vsub.f32 %v62_v8, %v943_v5  ;;  %v523_v14 = vsub.f32 %v63_v9, %v948_v6  ;;  %v71_v21 = vand.u32 8388607, %v971_v15  ;;  %v987_v22 = vand.u32 2147483647, %v933_v3  ;;  %s991_s3 = sld [smem:[#allocation2 + $0x3]]  ;;  %s876_s10 = smov 0.0  }
  0x14   :  { %586 = vrot.lane.b32.xlu0 %v928_v2, %s868_s26  ;;  %606 = vrot.lane.b32.xlu1 %v933_v3, %s868_s26  ;;  %v524_v17 = vmul.f32 %v521_v10, %v521_v10  ;;  %v772_v24 = vadd.s32 4294967169, %v68_v18  ;;  %v995_v28 = vand.u32 2147483647, %v978_v16  ;;  %v274_v29 = vand.u32 2139095040, %v978_v16  ;;  %s1066_s21 = sld [smem:[#allocation2 + $0x4]] }
  0x15   :  { %v525_v20 = vmul.f32 %v522_v13, %v522_v13  ;;  %v526_v23 = vmul.f32 %v523_v14, %v523_v14  ;;  %v72_v26 = vor.u32 8388608, %v71_v21  ;;  %827 = vrsqrt.f32 %v981_v19  ;;  %s1168_s0 = sld [smem:[#allocation2 + $0xa]] }
  0x16   :  { %v74_v27 = vadd.s32 1, %v772_v24  ;;  %v278_v31 = vand.u32 8388607, %v995_v28  ;;  %v275_v33 = vshrl.u32 %v274_v29, 23  ;;  %v546_v35 = vstv %s753_s19  ;;  %s1176_s29 = sld [smem:[#allocation2 + $0x5]] }
  0x17   :  { %v527_v25 = vadd.f32 %v525_v20, %v524_v17  ;;  %v542_v34 = vstv %s973_s1  ;;  %v1003_v38 = vshll.u32 %v72_v26, 8  ;;  %v1009_v42 = vsub.f32 %v981_v19, %v546_v35  ;;  %s1178_s30 = sld [smem:[#allocation2 + $0x7]] }
  0x18   :  { %616 = vrot.lane.b32.xlu0 %v978_v16, %s868_s26  ;;  %vm75_vm0 = vcmp.gt.s32.totalorder %v74_v27, 0  ;;  %v279_v39 = vor.u32 8388608, %v278_v31  ;;  %v780_v40 = vadd.s32 4294967169, %v275_v33  ;;  %v1006_v41 = vsub.f32 %v962_v12, %v542_v34  ;;  %s1170_s26 = sld [smem:[#allocation2 + $0xb]] }
  0x19   :  { %v999_v30 = vadd.f32 %v527_v25, %v526_v23  ;;  %v76_v32 = vsel %vm75_vm0, %v74_v27, 0  ;;  %v551_v43 = vstv %s984_s20  ;;  %v869_v45 = vmov 683565275   ;;  %s1180_s6 = sld [smem:[#allocation2 + $0xc]] }
  0x1a   :  { %v77_v36 = vshrl.u32 %v76_v32, 5  ;;  %v78_v37 = vand.u32 31, %v76_v32  ;;  %v870_v47 = vmov 2475754826   ;;  %v871_v49 = vmov 2131351028  }
  0x1b   :  { %v872_v51 = vmov 2102212464   ;;  %v873_v53 = vmov 920167782   ;;  %v556_v55 = vstv %s991_s3  ;;  %v874_v61 = vmov 1326507024  }
  0x1c   :  { %v79_v44 = vsub.s32 32, %v78_v37  ;;  %v81_v46 = vshll.u32 %v869_v45, %v78_v37  ;;  %v84_v48 = vshll.u32 %v870_v47, %v78_v37  ;;  %v87_v50 = vshll.u32 %v871_v49, %v78_v37  ;;  %s1182_s7 = sld [smem:[#allocation2 + $0xd]] }
  0x1d   :  { %v90_v52 = vshll.u32 %v872_v51, %v78_v37  ;;  %v93_v54 = vshll.u32 %v873_v53, %v78_v37  ;;  %vm96_vm1 = vcmp.lt.s32.totalorder %v77_v36, 1  ;;  %vm97_vm2 = vcmp.lt.s32.totalorder %v77_v36, 2  ;;  %s1188_s8 = sld [smem:[#allocation2 + $0x8]] }
  0x1e   :  { %v80_v56 = vshrl.u32 %v869_v45, %v79_v44  ;;  %v82_v57 = vshrl.u32 %v870_v47, %v79_v44  ;;  %v85_v58 = vshrl.u32 %v871_v49, %v79_v44  ;;  %v88_v59 = vshrl.u32 %v872_v51, %v79_v44  ;;  %s1195_s9 = sld [smem:[#allocation2 + $0x9]] }
  0x1f   :  { %v91_v60 = vshrl.u32 %v873_v53, %v79_v44  ;;  %v94_v62 = vshrl.u32 %v874_v61, %v79_v44  ;;  %vm99_vm3 = vcmp.lt.s32.totalorder %v77_v36, 4  ;;  %v281_v9 = vadd.s32 1, %v780_v40  ;;  %v1025_v14 = vpop.eup %825  ;;  %732 = sst [smem:[#allocation5 + $0x7]] %s876_s10 }
  0x20   :  { %v83_v63 = vor.u32 %v82_v57, %v81_v46  ;;  %v86_v7 = vor.u32 %v85_v58, %v84_v48  ;;  %v89_v8 = vor.u32 %v88_v59, %v87_v50  ;;  %vm98_vm4 = vcmp.lt.s32.totalorder %v77_v36, 3  ;;  %s766_s11 = sld [smem:[#allocation2 + $0xe]] }
  0x21   :  { %v92_v10 = vor.u32 %v91_v60, %v90_v52  ;;  %v95_v11 = vor.u32 %v94_v62, %v93_v54  ;;  %v1023_v13 = vshll.u32 %v279_v39, 8  ;;  %vm282_vm5 = vcmp.gt.s32.totalorder %v281_v9, 0  ;;  %s767_s12 = sld [smem:[#allocation2 + $0xf]] }
  0x22   :  { %v100_v17 = vsel %vm96_vm1, %v80_v56, %v83_v63  ;;  %v101_v18 = vsel %vm99_vm3, %v89_v8, 2102212464  ;;  %v104_v20 = vsel %vm96_vm1, %v83_v63, %v86_v7  ;;  %v108_v21 = vsel %vm96_vm1, %v86_v7, %v89_v8  ;;  %v1033_v26 = vpop.eup %827  ;;  %s768_s13 = sld [smem:[#allocation2 + $0x10]] }
  0x23   :  { %v102_v23 = vsel %vm98_vm4, %v86_v7, %v101_v18  ;;  %v105_v24 = vsel %vm99_vm3, %v92_v10, 920167782  ;;  %v109_v25 = vsel %vm99_vm3, %v95_v11, 1326507024  ;;  %v283_v32 = vsel %vm282_vm5, %v281_v9, 0  ;;  %s769_s20 = sld [smem:[#allocation2 + $0x11]] }
  0x24   :  { %v103_v27 = vsel %vm97_vm2, %v100_v17, %v102_v23  ;;  %v106_v29 = vsel %vm98_vm4, %v89_v8, %v105_v24  ;;  %v110_v31 = vsel %vm98_vm4, %v92_v10, %v109_v25  ;;  %v284_v35 = vshrl.u32 %v283_v32, 5  ;;  %s770_s3 = sld [smem:[#allocation2 + $0x12]] }
  0x25   :  { %v107_v33 = vsel %vm97_vm2, %v104_v20, %v106_v29  ;;  %v111_v34 = vsel %vm97_vm2, %v108_v21, %v110_v31  ;;  %v544_v37 = vmax.f32 %v1006_v41, 0.0  ;;  %v119_v48 = vmul.u32 %v1003_v38, %v103_v27  ;;  %s771_s22 = sld [smem:[#allocation2 + $0x13]] }
  0x26   :  { %v1040_v39 = vmul.u32.u64.low %v1003_v38, %v111_v34  ;;  %v1041_v40 = vmul.u32.u64.high %v1003_v38, %v111_v34, %v1040_v39  ;;  %v1044_v44 = vmul.u32.u64.low %v1003_v38, %v107_v33  ;;  %v1045_v46 = vmul.u32.u64.high %v1003_v38, %v107_v33, %v1044_v44 }
  0x27   :  { %v285_v50 = vand.u32 31, %v283_v32  ;;  %vm303_vm6 = vcmp.lt.s32.totalorder %v284_v35, 1  ;;  %vm304_vm7 = vcmp.lt.s32.totalorder %v284_v35, 2  ;;  %vm305_vm8 = vcmp.lt.s32.totalorder %v284_v35, 3 }
  0x28   :  { %vm306_vm9 = vcmp.lt.s32.totalorder %v284_v35, 4  ;;  %v548_v36 = vmax.f32 %v1009_v42, 0.0  ;;  %v552_v41 = vsub.f32 %v971_v15, %v551_v43  ;;  %vm121_vm10 = vc.u32 %v1041_v40, %v1044_v44 }
  0x29   :  { %v286_v52 = vsub.s32 32, %v285_v50  ;;  %v288_v54 = vshll.u32 %v869_v45, %v285_v50  ;;  %v291_v56 = vshll.u32 %v870_v47, %v285_v50  ;;  %v294_v57 = vshll.u32 %v871_v49, %v285_v50 }
  0x2a   :  { %v122_v38 = vadd.s32 1, %v1045_v46  ;;  %v297_v58 = vshll.u32 %v872_v51, %v285_v50  ;;  %v557_v59 = vsub.f32 %v987_v22, %v556_v55  ;;  %v300_v8 = vshll.u32 %v873_v53, %v285_v50 }
  0x2b   :  { %v287_v42 = vshrl.u32 %v869_v45, %v286_v52  ;;  %v289_v43 = vshrl.u32 %v870_v47, %v286_v52  ;;  %v292_v60 = vshrl.u32 %v871_v49, %v286_v52  ;;  %v295_v62 = vshrl.u32 %v872_v51, %v286_v52 }
  0x2c   :  { %v123_v63 = vsel %vm121_vm10, %v122_v38, %v1045_v46  ;;  %v298_v7 = vshrl.u32 %v873_v53, %v286_v52  ;;  %v301_v9 = vshrl.u32 %v874_v61, %v286_v52  ;;  %v549_v47 = vadd.f32 %v548_v36, %v544_v37 }
  0x2d   :  { %v124_v10 = vadd.s32 %v123_v63, %v119_v48  ;;  %v290_v11 = vor.u32 %v289_v43, %v288_v54  ;;  %v293_v55 = vor.u32 %v292_v60, %v291_v56  ;;  %v296_v17 = vor.u32 %v295_v62, %v294_v57 }
  0x2e   :  { %v299_v45 = vor.u32 %v298_v7, %v297_v58  ;;  %v302_v18 = vor.u32 %v301_v9, %v300_v8  ;;  %v553_v20 = vmax.f32 %v552_v41, 0.0  ;;  %v558_v41 = vmax.f32 %v557_v59, 0.0 }
  0x2f   :  { %v125_v49 = vadd.s32 536870912, %v124_v10  ;;  %v307_v51 = vsel %vm303_vm6, %v287_v42, %v290_v11  ;;  %v308_v21 = vsel %vm306_vm9, %v296_v17, 2102212464  ;;  %v311_v23 = vsel %vm303_vm6, %v290_v11, %v293_v55 }
  0x30   :  { %v309_v53 = vsel %vm305_vm8, %v293_v55, %v308_v21  ;;  %v312_v61 = vsel %vm306_vm9, %v299_v45, 920167782  ;;  %v315_v24 = vsel %vm303_vm6, %v293_v55, %v296_v17  ;;  %v316_v25 = vsel %vm306_vm9, %v302_v18, 1326507024 }
  0x31   :  { %v1075_v27 = vshrl.u32 %v125_v49, 30  ;;  %v313_v29 = vsel %vm305_vm8, %v296_v17, %v312_v61  ;;  %v317_v31 = vsel %vm305_vm8, %v299_v45, %v316_v25  ;;  %v554_v34 = vadd.f32 %v553_v20, %v549_v47 }
  0x32   :  { %v314_v32 = vsel %vm304_vm7, %v311_v23, %v313_v29  ;;  %v318_v33 = vsel %vm304_vm7, %v315_v24, %v317_v31  ;;  %v310_v39 = vsel %vm304_vm7, %v307_v51, %v309_v53  ;;  %v561_v52 = vstv %s1066_s21 }
  0x33   :  { %v127_v37 = vshll.u32 %v1075_v27, 30  ;;  %v1084_v46 = vmul.u32.u64.low %v1023_v13, %v318_v33  ;;  %v1085_v48 = vmul.u32.u64.high %v1023_v13, %v318_v33, %v1084_v46  ;;  %v562_v56 = vsub.f32 %v995_v28, %v561_v52 }
  0x34   :  { %v1089_v50 = vmul.u32.u64.low %v1023_v13, %v314_v32  ;;  %v1090_v36 = vmul.u32.u64.high %v1023_v13, %v314_v32, %v1089_v50  ;;  %v559_v57 = vadd.f32 %v558_v41, %v554_v34  ;;  %v326_v35 = vmul.u32 %v1023_v13, %v310_v39 }
  0x35   :  { %v128_v54 = vsub.s32 %v124_v10, %v127_v37  ;;  %v636_v8 = vmul.f32 %v1025_v14, %v962_v12  ;;  %829 = vrsqrt.f32 %v987_v22  ;;  %v120_v13 = vadd.s32 %v1044_v44, %v1041_v40 }
  0x36   :  { %vm328_vm11 = vc.u32 %v1085_v48, %v1089_v50  ;;  %v329_v58 = vadd.s32 1, %v1090_v36  ;;  %vm637_vm13 = vcmp.eq.f32.partialorder %v962_v12, inf  ;;  %v644_v11 = vmul.f32 %v1033_v26, %v981_v19 }
  0x37   :  { %529 = vadd.xlane.f32.xlu0 %v999_v30  ;;  %v130_v38 = vsub.s32 0, %v128_v54  ;;  %v563_v30 = vmax.f32 %v562_v56, 0.0  ;;  %vm645_vm14 = vcmp.eq.f32.partialorder %v981_v19, inf  ;;  %v638_v18 = vsel %vm637_vm13, %v962_v12, %v636_v8 }
  0x38   :  { %v330_v43 = vsel %vm328_vm11, %v329_v58, %v1090_v36  ;;  %vm639_vm15 = vcmp.eq.f32.partialorder %v962_v12, 0.0  ;;  %v640_v40 = vand.u32 2147483648, %v962_v12  ;;  %v648_v49 = vand.u32 2147483648, %v981_v19 }
  0x39   :  { %v773_v42 = vmin.u32 %v130_v38, %v128_v54  ;;  %v564_v60 = vadd.f32 %v563_v30, %v559_v57  ;;  %v331_v59 = vadd.s32 %v330_v43, %v326_v35  ;;  %v646_v26 = vsel %vm645_vm14, %v981_v19, %v644_v11 }
  0x3a   :  { %vm647_vm0 = vcmp.eq.f32.partialorder %v981_v19, 0.0  ;;  %v641_v53 = vsel %vm639_vm15, %v640_v40, %v638_v18  ;;  %vm66_vm1 = vcmp.lt.s32.totalorder %v919_v1, 0  ;;  %vm654_vm2 = vcmp.eq.f32.partialorder %v987_v22, inf }
  0x3b   :  { %v132_v62 = vclz %v773_v42  ;;  %565 = vadd.xlane.f32.xlu0 %v564_v60  ;;  %v332_v7 = vadd.s32 536870912, %v331_v59  ;;  %v649_v29 = vsel %vm647_vm0, %v648_v49, %v646_v26  ;;  %v642_v33 = vmul.f32 %v641_v53, %v962_v12 }
  0x3c   :  { %v650_v34 = vmul.f32 %v649_v29, %v981_v19  ;;  %vm65_vm3 = vcmp.le.f32.partialorder %v971_v15, 0.7853982  ;;  %v150_v36 = vsub.s32 4, %v1075_v27  ;;  %v657_v52 = vand.u32 2147483648, %v987_v22 }
  0x3d   :  { %v774_v63 = vadd.s32 4294967294, %v132_v62  ;;  %v1105_v9 = vshrl.u32 %v332_v7, 30  ;;  %v327_v12 = vadd.s32 %v1089_v50, %v1085_v48  ;;  %vm656_vm5 = vcmp.eq.f32.partialorder %v987_v22, 0.0 }
  0x3e   :  { %v651_v56 = vadd.f32 %v650_v34, %v642_v33  ;;  %v151_v42 = vsel %vm66_vm1, %v150_v36, %v1075_v27  ;;  %vm273_vm6 = vcmp.lt.s32.totalorder %v978_v16, 0  ;;  %vm272_vm7 = vcmp.le.f32.partialorder %v995_v28, 0.7853982 }
  0x3f   :  { %vm775_vm12 = vcmp.lt.s32.totalorder %v774_v63, 0  ;;  %v334_v14 = vshll.u32 %v1105_v9, 30  ;;  %vm156_vm14 = vweird.f32 %v919_v1 }
  0x40   :  { %v135_v10 = vsel %vm775_vm12, 0, %v774_v63 }
  0x41   :  { %v136_v55 = vsub.s32 32, %v135_v10  ;;  %v137_v17 = vshll.u32 %v128_v54, %v135_v10  ;;  %v140_v45 = vsub.s32 4294967266, %v135_v10  ;;  %v335_v20 = vsub.s32 %v331_v59, %v334_v14 }
  0x42   :  { %v830_v37 = vpop.eup %829  ;;  %v153_v59 = vsel %vm65_vm3, 0, %v151_v42  ;;  %v357_v14 = vsub.s32 4, %v1105_v9 }
  0x43   :  { %v138_v44 = vshrl.u32 %v120_v13, %v136_v55  ;;  %v141_v47 = vadd.s32 127, %v140_v45  ;;  %v337_v23 = vsub.s32 0, %v335_v20  ;;  %v653_v41 = vmul.f32 %v830_v37, %v987_v22 }
  0x44   :  { %v260_v27 = vadd.s32 3, %v153_v59  ;;  %v358_v40 = vsel %vm273_vm6, %v357_v14, %v1105_v9 }
  0x45   :  { %v139_v51 = vor.u32 %v138_v44, %v137_v17  ;;  %v142_v21 = vshll.u32 %v141_v47, 23  ;;  %v781_v25 = vmin.u32 %v337_v23, %v335_v20  ;;  %v655_v57 = vsel %vm654_vm2, %v987_v22, %v653_v41 }
  0x46   :  { %v658_v50 = vsel %vm656_vm5, %v657_v52, %v655_v57  ;;  %v157_v17 = vand.u32 3, %v153_v59  ;;  %v261_v45 = vand.u32 3, %v260_v27  ;;  %vm363_vm5 = vweird.f32 %v978_v16 }
  0x47   :  { %v143_v61 = vor.u32 4788187, %v142_v21  ;;  %v146_v24 = vcvt.s32.f32 %v139_v51  ;;  %v339_v32 = vclz %v781_v25  ;;  %v659_v62 = vmul.f32 %v658_v50, %v987_v22 }
  0x48   :  { %vm162_vm8 = vcmp.eq.s32.totalorder %v157_v17, 2  ;;  %vm266_vm9 = vcmp.eq.s32.totalorder %v261_v45, 2  ;;  %vm159_vm10 = vcmp.eq.s32.totalorder %v157_v17, 0  ;;  %vm263_vm11 = vcmp.eq.s32.totalorder %v261_v45, 0 }
  0x49   :  { %v144_v31 = vand.u32 2147483647, %v143_v61  ;;  %v782_v46 = vadd.s32 4294967294, %v339_v32  ;;  %v660_v8 = vadd.f32 %v659_v62, %v651_v56  ;;  %vm158_vm12 = vcmp.lt.s32.totalorder %v157_v17, 2 }
  0x4a   :  { %vm262_vm13 = vcmp.lt.s32.totalorder %v261_v45, 2  ;;  %v360_v21 = vsel %vm272_vm7, 0, %v358_v40  ;;  %v485_v57 = vmul.f32 14.5, %v914_v0 }
  0x4b   :  { %v147_v39 = vmul.f32 %v146_v24, %v144_v31  ;;  %vm783_vm4 = vcmp.lt.s32.totalorder %v782_v46, 0  ;;  %661 = vadd.xlane.f32.xlu0 %v660_v8  ;;  %v467_v24 = vadd.s32 3, %v360_v21  ;;  %v364_v31 = vand.u32 3, %v360_v21 }
  0x4c   :  { %v342_v19 = vsel %vm783_vm4, 0, %v782_v46 }
  0x4d   :  { %v148_v54 = vxor.u32 2147483648, %v147_v39  ;;  %v343_v35 = vsub.s32 32, %v342_v19  ;;  %v344_v58 = vshll.u32 %v335_v20, %v342_v19  ;;  %v347_v30 = vsub.s32 4294967266, %v342_v19 }
  0x4e   :  { %v468_v32 = vand.u32 3, %v467_v24  ;;  %vm366_vm15 = vcmp.eq.s32.totalorder %v364_v31, 0  ;;  %vm369_vm0 = vcmp.eq.s32.totalorder %v364_v31, 2 }
  0x4f   :  { %v149_v38 = vsel %vm66_vm1, %v148_v54, %v147_v39  ;;  %v345_v43 = vshrl.u32 %v327_v12, %v343_v35  ;;  %v348_v60 = vadd.s32 127, %v347_v30 }
  0x50   :  { %v152_v48 = vsel %vm65_vm3, %v919_v1, %v149_v38  ;;  %vm473_vm1 = vcmp.eq.s32.totalorder %v468_v32, 2  ;;  %vm470_vm2 = vcmp.eq.s32.totalorder %v468_v32, 0  ;;  %vm365_vm3 = vcmp.lt.s32.totalorder %v364_v31, 2 }
  0x51   :  { %831 = vcosq.f32 %v152_v48  ;;  %v346_v63 = vor.u32 %v345_v43, %v344_v58  ;;  %v349_v7 = vshll.u32 %v348_v60, 23  ;;  %vm469_vm4 = vcmp.lt.s32.totalorder %v468_v32, 2 }
  0x52   :  { %833 = vsinq.f32 %v152_v48 }
  0x53   :  { %v350_v13 = vor.u32 4788187, %v349_v7  ;;  %v353_v10 = vcvt.s32.f32 %v346_v63 }
  0x55   :  { %v351_v11 = vand.u32 2147483647, %v350_v13  ;;  %v574_v13 = vlaneseq }
  0x57   :  { %v354_v55 = vmul.f32 %v353_v10, %v351_v11  ;;  %v575_v14 = vand.u32 127, %v574_v13 }
  0x59   :  { %v355_v22 = vxor.u32 2147483648, %v354_v55 }
  0x5b   :  { %v356_v15 = vsel %vm273_vm6, %v355_v22, %v354_v55  ;;  %vm576_vm6 = vcmp.eq.s32.totalorder %v575_v14, 127 }
  0x5c   :  { %v359_v44 = vsel %vm272_vm7, %v978_v16, %v356_v15 }
  0x5d   :  { %835 = vcosq.f32 %v359_v44 }
  0x5e   :  { %v832_v18 = vpop.eup %831  ;;  %837 = vsinq.f32 %v359_v44 }
  0x5f   :  { %v834_v47 = vpop.eup %833  ;;  %v163_v20 = vxor.u32 2147483648, %v832_v18 }
  0x60   :  { %v160_v49 = vxor.u32 2147483648, %v834_v47 }
  0x61   :  { %v164_v26 = vsel %vm162_vm8, %v163_v20, %v834_v47  ;;  %v268_v51 = vsel %vm266_vm9, %v163_v20, %v834_v47 }
  0x62   :  { %v161_v23 = vsel %vm159_vm10, %v832_v18, %v160_v49  ;;  %v265_v9 = vsel %vm263_vm11, %v832_v18, %v160_v49  ;;  %v670_v49 = vstv %s1168_s0 }
  0x63   :  { %v165_v53 = vsel %vm158_vm12, %v161_v23, %v164_v26  ;;  %v269_v61 = vsel %vm262_vm13, %v265_v9, %v268_v51  ;;  %v672_v26 = vstv %s1170_s26  ;;  %vm1198_vm7 = vcmp.gt.f32.partialorder %v919_v1, %v670_v49 }
  0x64   :  { %v166_v25 = vsel %vm156_vm14, nan, %v165_v53  ;;  %v270_v29 = vsel %vm156_vm14, nan, %v269_v61  ;;  %v583_v53 = vstv %s1176_s29  ;;  %vm1203_vm8 = vcmp.lt.f32.partialorder %v919_v1, %v672_v26 }
  0x65   :  { %v486_v33 = vmul.f32 -14.0, %v270_v29  ;;  %v487_v34 = vmul.f32 -2.7, %v166_v25  ;;  %v481_v46 = vmul.f32 %v270_v29, %v928_v2  ;;  %v478_v56 = vmul.f32 %v166_v25, %v928_v2  ;;  %vm674_vm11 = vmand %vm1198_vm7, %vm1203_vm8 }
  0x66   :  { %vm1208_vm9 = vcmp.gt.f32.partialorder %v978_v16, %v670_v49  ;;  %vm1215_vm10 = vcmp.lt.f32.partialorder %v978_v16, %v672_v26 }
  0x67   :  { %v488_v36 = vsub.f32 %v486_v33, %v487_v34  ;;  %v482_v58 = vadd.f32 %v481_v46, %v914_v0  ;;  %vm679_vm12 = vmand %vm1208_vm9, %vm1215_vm10 }
  0x69   :  { %v489_v30 = vmul.f32 %v488_v36, %v928_v2 }
  0x6a   :  { %v836_v37 = vpop.eup %835 }
  0x6b   :  { %v838_v39 = vpop.eup %837  ;;  %v370_v28 = vxor.u32 2147483648, %v836_v37  ;;  %v490_v7 = vadd.f32 %v489_v30, %v485_v57 }
  0x6c   :  { %v367_v41 = vxor.u32 2147483648, %v838_v39 }
  0x6d   :  { %v371_v52 = vsel %vm369_vm0, %v370_v28, %v838_v39  ;;  %v475_v54 = vsel %vm473_vm1, %v370_v28, %v838_v39 }
  0x6e   :  { %v368_v12 = vsel %vm366_vm15, %v836_v37, %v367_v41  ;;  %v472_v19 = vsel %vm470_vm2, %v836_v37, %v367_v41  ;;  %v683_v37 = vstv %s1180_s6  ;;  %v685_v41 = vstv %s1182_s7 }
  0x6f   :  { %v372_v38 = vsel %vm365_vm3, %v368_v12, %v371_v52  ;;  %v476_v35 = vsel %vm469_vm4, %v472_v19, %v475_v54  ;;  %v602_v52 = vstv %s1178_s30  ;;  %vm1236_vm13 = vcmp.gt.f32.partialorder %v919_v1, %v683_v37  ;;  %s741_s30 = sshll.u32 %s1261_s5, 4  ;;  %s742_s30 = int_to_ptr.vmem [resolvable:$true] %s741_s30 }
  0x70   :  { %v373_v42 = vsel %vm363_vm5, nan, %v372_v38  ;;  %v477_v48 = vsel %vm363_vm5, nan, %v476_v35  ;;  %vm1241_vm14 = vcmp.lt.f32.partialorder %v919_v1, %v685_v41  ;;  %vm691_vm0 = vcmp.gt.f32.partialorder %v978_v16, %v683_v37  ;;  %p856_p6 = scmp.lt.s32.totalorder %s742_s30, %s742_s30 }
  0x71   :  { %v479_v50 = vmul.f32 %v373_v42, %v933_v3  ;;  %v483_v43 = vmul.f32 %v477_v48, %v933_v3  ;;  %v491_v60 = vmul.f32 -14.0, %v477_v48  ;;  %v492_v62 = vmul.f32 2.7, %v373_v42  ;;  %vm687_vm15 = vmand %vm1236_vm13, %vm1241_vm14 }
  0x72   :  { %v622_v48 = vstv %s1195_s9  ;;  %vm692_vm1 = vcmp.lt.f32.partialorder %v978_v16, %v685_v41  ;;  %s851_s9 = scalar_lea.vmem %s742_s30, 16 }
  0x73   :  { %v480_v59 = vadd.f32 %v479_v50, %v478_v56  ;;  %v484_v63 = vadd.f32 %v483_v43, %v482_v58  ;;  %v493_v8 = vsub.f32 %v491_v60, %v492_v62  ;;  %v875_v50 = vmov 0.0   ;;  %vm693_vm2 = vmand %vm691_vm0, %vm692_vm1  ;;  %p852_p5 = scmp.ne.s32.totalorder %s742_s30, %s851_s9  ;;  %p857_p7 = scmp.lt.s32.totalorder %s851_s9, %s851_s9 }
  0x74   :  { %v790_v43 = vsel %vm674_vm11, 1.0, %v875_v50  ;;  %v791_v60 = vsel %vm679_vm12, 1.0, %v875_v50 }
  0x75   :  { %v494_v10 = vmul.f32 %v493_v8, %v933_v3  ;;  %496 = vst [vmem:[%s1260_s4] sm:$0xff] %v480_v59  ;;  %v501_v27 = vsub.f32 %v480_v59, %v938_v4  ;;  %v502_v11 = vsub.f32 %v484_v63, %v943_v5  ;;  %788 = vst [vmem:[%s1260_s4 + $0x8] sm:$0xff] %v484_v63  ;;  %p858_p8 = por %p857_p7, %p856_p6 }
  0x77   :  { %v495_v55 = vadd.f32 %v494_v10, %v490_v7  ;;  %v504_v17 = vmul.f32 %v501_v27, %v501_v27  ;;  %v505_v45 = vmul.f32 %v502_v11, %v502_v11  ;;  %v682_v10 = vadd.f32 %v791_v60, %v790_v43  ;;  %p859_p9 = pnand %p858_p8, %p852_p5 }
  0x78   :  { %v792_v27 = vsel %vm687_vm15, 1.0, %v875_v50 }
  0x79   :  { %789 = vst [vmem:[%s1260_s4 + $0x10] sm:$0xff] %v495_v55  ;;  %v503_v4 = vsub.f32 %v495_v55, %v948_v6  ;;  %v506_v22 = vadd.f32 %v505_v45, %v504_v17  ;;  %s1184_s4 = sld [smem:[#allocation2 + $0x6]]  ;;  %v690_v14 = vadd.f32 %v792_v27, %v682_v10 }
  0x7b   :  { %v507_v5 = vmul.f32 %v503_v4, %v503_v4  ;;  %v793_v4 = vsel %vm693_vm2, 1.0, %v875_v50 }
  0x7d   :  { %v508_v40 = vadd.f32 %v507_v5, %v506_v22  ;;  %v696_v5 = vadd.f32 %v793_v4, %v690_v14 }
  0x7f   :  { %509 = vadd.xlane.f32.xlu1 %v508_v40  ;;  %v592_v54 = vstv %s1184_s4 }
  0x82   :  { %v578_v15 = vpop.permute.xlu0 %577  ;;  %v597_v18 = vpop.permute.xlu1 %596 }
  0x83   :  { %v579_v44 = vrot.slane %v578_v15, 1  ;;  %v598_v47 = vrot.slane %v597_v18, 1 }
  0x85   :  { %v580_v6 = vsel %vm576_vm6, %v579_v44, %v578_v15  ;;  %v599_v20 = vsel %vm576_vm6, %v598_v47, %v597_v18 }
  0x86   :  { %v581_v51 = vsub.f32 %v914_v0, %v580_v6  ;;  %v600_v21 = vsub.f32 %v919_v1, %v599_v20  ;;  %v587_v23 = vpop.permute.xlu0 %586  ;;  %v607_v9 = vpop.permute.xlu1 %606 }
  0x87   :  { %v588_v61 = vrot.slane %v587_v23, 1  ;;  %v608_v24 = vrot.slane %v607_v9, 1 }
  0x88   :  { %v582_v25 = vand.u32 2147483647, %v581_v51  ;;  %v601_v39 = vand.u32 2147483647, %v600_v21 }
  0x89   :  { %v589_v32 = vsel %vm576_vm6, %v588_v61, %v587_v23  ;;  %v609_v33 = vsel %vm576_vm6, %v608_v24, %v607_v9 }
  0x8a   :  { %v590_v28 = vsub.f32 %v928_v2, %v589_v32  ;;  %v610_v46 = vsub.f32 %v933_v3, %v609_v33  ;;  %v617_v36 = vpop.permute.xlu0 %616  ;;  %v584_v19 = vsub.f32 %v582_v25, %v583_v53  ;;  %v612_v2 = vstv %s1188_s8 }
  0x8b   :  { %v618_v12 = vrot.slane %v617_v36, 1  ;;  %v603_v58 = vsub.f32 %v601_v39, %v602_v52 }
  0x8c   :  { %v591_v56 = vand.u32 2147483647, %v590_v28  ;;  %v611_v57 = vand.u32 2147483647, %v610_v46  ;;  %v585_v62 = vmax.f32 %v584_v19, 0.0 }
  0x8d   :  { %v619_v3 = vsel %vm576_vm6, %v618_v12, %v617_v36  ;;  %v604_v1 = vmax.f32 %v603_v58, 0.0 }
  0x8e   :  { %v593_v30 = vsub.f32 %v591_v56, %v592_v54  ;;  %v620_v42 = vsub.f32 %v978_v16, %v619_v3  ;;  %v613_v63 = vsub.f32 %v611_v57, %v612_v2 }
  0x90   :  { %v594_v59 = vmax.f32 %v593_v30, 0.0  ;;  %v621_v7 = vand.u32 2147483647, %v620_v42  ;;  %v614_v55 = vmax.f32 %v613_v63, 0.0 }
  0x92   :  { %v595_v8 = vadd.f32 %v594_v59, %v585_v62  ;;  %v623_v13 = vsub.f32 %v621_v7, %v622_v48 }
  0x94   :  { %v605_v11 = vadd.f32 %v604_v1, %v595_v8  ;;  %v624_v45 = vmax.f32 %v623_v13, 0.0 }
  0x96   :  { %v615_v17 = vadd.f32 %v614_v55, %v605_v11 }
  0x98   :  { %v625_v22 = vadd.f32 %v624_v45, %v615_v17 }
  0x9a   :  { %626 = vadd.xlane.f32.xlu1 %v625_v22 }
  0x9e   :  { %697 = vadd.xlane.f32.xlu1 %v696_v5 }
  0xc0   :  { %v530_v15 = vpop.xlane.xlu0 %529 }
  0xc1   :  { %v531_v18 = vrot.slane %v530_v15, 4 }
  0xc3   :  { %v532_v44 = vadd.f32 %v531_v18, %v530_v15 }
  0xc4   :  { %v566_v16 = vpop.xlane.xlu0 %565 }
  0xc5   :  { %v567_v40 = vrot.slane %v566_v16, 4  ;;  %v533_v6 = vrot.slane %v532_v44, 2 }
  0xc7   :  { %v568_v47 = vadd.f32 %v567_v40, %v566_v16  ;;  %v534_v51 = vadd.f32 %v533_v6, %v532_v44 }
  0xc9   :  { %v569_v20 = vrot.slane %v568_v47, 2  ;;  %v535_v53 = vrot.slane %v534_v51, 1 }
  0xcb   :  { %v570_v23 = vadd.f32 %v569_v20, %v568_v47  ;;  %v536_v29 = vadd.f32 %v535_v53, %v534_v51 }
  0xcd   :  { %v571_v24 = vrot.slane %v570_v23, 1 }
  0xcf   :  { %v572_v32 = vadd.f32 %v571_v24, %v570_v23 }
  0xd4   :  { %v662_v0 = vpop.xlane.xlu0 %661 }
  0xd5   :  { %v663_v33 = vrot.slane %v662_v0, 4 }
  0xd7   :  { %v664_v34 = vadd.f32 %v663_v33, %v662_v0 }
  0xd9   :  { %v665_v37 = vrot.slane %v664_v34, 2 }
  0xdb   :  { %v666_v36 = vadd.f32 %v665_v37, %v664_v34 }
  0xdd   :  { %v667_v56 = vrot.slane %v666_v36, 1 }
  0xdf   :  { %v668_v35 = vadd.f32 %v667_v56, %v666_v36 }
 0x108   :  { %v510_v49 = vpop.xlane.xlu1 %509 }
 0x109   :  { %v511_v26 = vrot.slane %v510_v49, 4 }
 0x10b   :  { %v512_v21 = vadd.f32 %v511_v26, %v510_v49 }
 0x10d   :  { %v513_v9 = vrot.slane %v512_v21, 2 }
 0x10f   :  { %v514_v61 = vadd.f32 %v513_v9, %v512_v21 }
 0x111   :  { %v515_v25 = vrot.slane %v514_v61, 1 }
 0x113   :  { %v516_v31 = vadd.f32 %v515_v25, %v514_v61 }
 0x115   :  { %802 = vpush %v516_v31 }
 0x116   :  { %804 = vpush %v536_v29 }
 0x117   :  { %806 = vpush %v572_v32 }
 0x123   :  { %v627_v39 = vpop.xlane.xlu1 %626 }
 0x124   :  { %v628_v28 = vrot.slane %v627_v39, 4 }
 0x126   :  { %v629_v46 = vadd.f32 %v628_v28, %v627_v39 }
 0x127   :  { %v698_v41 = vpop.xlane.xlu1 %697 }
 0x128   :  { %v630_v52 = vrot.slane %v629_v46, 2  ;;  %v699_v54 = vrot.slane %v698_v41, 4 }
 0x12a   :  { %v700_v12 = vadd.f32 %v699_v54, %v698_v41  ;;  %v631_v19 = vadd.f32 %v630_v52, %v629_v46 }
 0x12c   :  { %v701_v57 = vrot.slane %v700_v12, 2  ;;  %v632_v2 = vrot.slane %v631_v19, 1 }
 0x12e   :  { %v702_v3 = vadd.f32 %v701_v57, %v700_v12  ;;  %v633_v38 = vadd.f32 %v632_v2, %v631_v19 }
 0x130   :  { %808 = vpush %v633_v38  ;;  %v703_v58 = vrot.slane %v702_v3, 1 }
 0x131   :  { %810 = vpush %v668_v35 }
 0x132   :  { %v704_v30 = vadd.f32 %v703_v58, %v702_v3 }
 0x134   :  { %812 = vpush %v704_v30 }
 0x146   :  { %s803_s14 = spop %802 }
 0x147   :  { %s520_s15 = smul.f32 0.00032552084, %s803_s14  ;;  %s805_s16 = spop %804 }
 0x148   :  { %s540_s17 = smul.f32 0.00032552084, %s805_s16  ;;  %s807_s1 = spop %806 }
 0x149   :  { %s706_s2 = smul.f32 %s766_s11, %s520_s15 }
 0x14a   :  { %s707_s18 = smul.f32 %s767_s12, %s540_s17 }
 0x14b   :  { %720 = sst [smem:[#allocation5 + $0x1]] %s706_s2  ;;  %s708_s19 = smul.f32 %s807_s1, %s768_s13 }
 0x14c   :  { %722 = sst [smem:[#allocation5 + $0x2]] %s707_s18 }
 0x14d   :  { %724 = sst [smem:[#allocation5 + $0x3]] %s708_s19 }
 0x14e   :  { %s712_s21 = sadd.f32 %s707_s18, %s706_s2 }
 0x150   :  { %s713_s23 = sadd.f32 %s712_s21, %s708_s19 }
 0x161   :  { %s809_s24 = spop %808 }
 0x162   :  { %s709_s25 = smul.f32 %s809_s24, %s769_s20  ;;  %s811_s0 = spop %810 }
 0x163   :  { %s710_s26 = smul.f32 %s811_s0, %s770_s3 }
 0x164   :  { %s714_s27 = sadd.f32 %s713_s23, %s709_s25 }
 0x165   :  { %726 = sst [smem:[#allocation5 + $0x4]] %s709_s25  ;;  %s813_s6 = spop %812 }
 0x166   :  { %s715_s7 = sadd.f32 %s714_s27, %s710_s26  ;;  %s711_s4 = smul.f32 %s813_s6, %s771_s22 }
 0x167   :  { %728 = sst [smem:[#allocation5 + $0x5]] %s710_s26 }
 0x168   :  { %s716_s8 = sadd.f32 %s715_s7, %s711_s4 }
 0x169   :  { %730 = sst [smem:[#allocation5 + $0x6]] %s711_s4 }
 0x16a   :  { %718 = sst [smem:[#allocation5]] %s716_s8 }
 0x16b   :  { %862 = shalt.err (!%p859_p9)
}
 0x16c   :  { %s877_s10 = smov [#allocation5]  }
 0x16d   :  { %744 = dma.smem_to_vmem %s877_s10, 16, %s742_s30, [#allocation4]  }
 0x16e   :  { %865 = dma.done.wait [#allocation4], 16  }
 0x16f   :  { %866 = vsyncadd [#allocation4], 4294967280 }
 0x170   :  { %750 = sfence }
 0x171   :  { %751 = vsyncpa [#allocation3], 1 }
 0x172   :  { %752 = vsyncpa [#allocation4], 1 }

</bundles_post_ra>
